<compile_context>
chip_gen: v5e
topology: v5e:2x2
jax: 0.10.0
libtpu: 0.0.40
codegen_flags: <defaults>
</compile_context>

<pallas_src>
import jax
import jax.numpy as jnp
from jax.experimental import pallas as pl
from jax.experimental.pallas import tpu as pltpu

EPS = 1e-5

# MXU input dtype. Set to jnp.bfloat16 for ~2-4x matmul throughput and half
# the weight-matrix DMA bytes, at reduced precision (re-validate tolerance).
MXU_DTYPE = jnp.float32


# ---------------------------------------------------------------------------
# Kernels
# ---------------------------------------------------------------------------
def _conv_core(x2, h_img, m_ref, y_ref, st_ref):
    """3x3 'same' conv of Nb stacked images in fused (Nb*H, W*Cin) layout.

    x2     : (Nb*H, W*Cin) f32 activation rows (post-activation for conv2)
    h_img  : static per-image height H
    m_ref  : (3, W*Cin, W*Cout) banded weight matrices (one per ky tap)
    y_ref  : (Nb, H, W*Cout)  raw conv output (pre-BN), lane-dense store
    st_ref : (8, W*Cout)      per-block partial BN stats (row0=sum, row1=sumsq)
    """
    m_rows = x2.shape[0]
    nb = m_rows // h_img
    xd = x2.astype(m_ref.dtype)

    # Three tall, lane-dense MXU matmuls (M = Nb*H rows) — one per ky tap.
    y0 = jnp.dot(xd, m_ref[0], preferred_element_type=jnp.float32)
    y1 = jnp.dot(xd, m_ref[1], preferred_element_type=jnp.float32)
    y2 = jnp.dot(xd, m_ref[2], preferred_element_type=jnp.float32)
    wc_out = y1.shape[1]

    # Row shift via XLU roll + boundary-row masking == zero padding along H.
    hidx = jax.lax.broadcasted_iota(
        jnp.int32, (nb, h_img, wc_out), 1).reshape(m_rows, wc_out)
    acc = y1
    acc = acc + jnp.where(hidx == 0, 0.0,
                          pltpu.roll(y0, 1, axis=0))            # uses x[h-1]
    acc = acc + jnp.where(hidx == h_img - 1, 0.0,
                          pltpu.roll(y2, m_rows - 1, axis=0))   # uses x[h+1]

    y_ref[...] = acc.reshape(y_ref.shape).astype(y_ref.dtype)

    # Fused single-pass stats (sum, sum of squares) over the row axis, padded
    # to 8 sublanes so the store is a full unmasked tile.  The tiny fold over
    # W / grid blocks and the mean/var math happen in the wrapper.
    s1 = jnp.sum(acc, axis=0, keepdims=True)
    s2 = jnp.sum(acc * acc, axis=0, keepdims=True)
    st_ref[...] = jnp.concatenate(
        [s1, s2, jnp.zeros((6, wc_out), jnp.float32)], axis=0)


def _conv1_kernel(x_ref, m_ref, y_ref, st_ref):
    nb, h_img, wc = x_ref.shape
    x2 = x_ref[...].reshape(nb * h_img, wc).astype(jnp.float32)
    _conv_core(x2, h_img, m_ref, y_ref, st_ref)


def _conv2_kernel(x_ref, m_ref, scale_ref, shift_ref, y_ref, st_ref):
    # BN1 affine + ReLU applied pointwise on the lane-dense slab, then conv2.
    nb, h_img, wc = x_ref.shape
    x2 = x_ref[...].reshape(nb * h_img, wc).astype(jnp.float32)
    x2 = jnp.maximum(x2 * scale_ref[...] + shift_ref[...], 0.0)
    _conv_core(x2, h_img, m_ref, y_ref, st_ref)


# ---------------------------------------------------------------------------
# Wrapper-side helpers (tiny, pure JAX / trace-time Python)
# ---------------------------------------------------------------------------
def _banded_conv_matrix(w_hwio, width):
    """Fold a KxK HWIO conv weight into K banded (W*Cin, W*Cout) matrices.

    M[ky, u*Cin + ci, w*Cout + co] = w_hwio[ky, kx, ci, co] with u = w + kx - 1.
    Entries with u outside [0, W) are zero == "same" zero padding along W.
    """
    K, _, cin, cout = w_hwio.shape
    u = jnp.arange(width)
    w = jnp.arange(width)
    k = jnp.arange(K)
    ind = (u[:, None, None] ==
           (w[None, :, None] + k[None, None, :] - (K // 2))).astype(w_hwio.dtype)
    m = jnp.einsum('uwx,yxio->yuiwo', ind, w_hwio)      # (K, W, Cin, W, Cout)
    return m.reshape(K, width * cin, width * cout)


def _bn_lane_affine(stats, gamma, beta, width, channels, count):
    """Reduce per-block partial stats -> per-lane (1, W*C) BN scale / shift."""
    s = stats[:, :2, :].sum(axis=0)                              # (2, W*C)
    s = s.reshape(2, width, channels).sum(axis=1)                # (2, C)
    mean = s[0] / count
    var = s[1] / count - mean * mean                 # biased var, single pass
    scale = gamma * jax.lax.rsqrt(var + EPS)
    shift = beta - mean * scale
    return (jnp.tile(scale, width).reshape(1, width * channels),
            jnp.tile(shift, width).reshape(1, width * channels))


def _pick_block_n(n, h, target_rows=256):
    """Images per grid step: divisor of N, Nb*H <= target_rows, prefer grid>=2."""
    divisors = [d for d in range(1, n + 1) if n % d == 0]
    fits = [d for d in divisors if d * h <= target_rows] or [1]
    keep_two = [d for d in fits if n // d >= 2]
    return max(keep_two) if keep_two else max(fits)


def _pick_vmem_limit():
    """~3/4 of physical VMEM, capped at 100 MiB (96 MiB v5e/v6e, 48 MiB v7x)."""
    cap = None
    try:
        cap = getattr(pltpu.get_tpu_info(), "vmem_capacity_bytes", None)
    except Exception:
        cap = None
    if not cap:
        try:
            kind = jax.devices()[0].device_kind.lower()
            cap = (64 if ("v7" in kind or "7x" in kind) else 128) * 1024 * 1024
        except Exception:
            cap = 64 * 1024 * 1024
    return int(min(100 * 1024 * 1024, cap * 3 // 4))


# ---------------------------------------------------------------------------
# Public forward
# ---------------------------------------------------------------------------
def non_bt_forward(x_nchw, w1_oihw, w2_oihw, gamma1, beta1, gamma2, beta2):
    """x_nchw: (N, C, H, W) float32.  Returns (N, C, H, W)."""
    N, Cin, H, W = x_nchw.shape
    Cout, _, kh, kw = w1_oihw.shape
    if Cin != Cout:
        raise ValueError("non_bt residual add requires in_channels == out_channels")
    if kh != 3 or kw != 3:
        raise ValueError("this kernel supports kernel_size=3, stride=1, dilation=1")
    C = Cout
    WC = W * C
    count = N * H * W

    # NCHW -> NHWC with (W, C) fused into the lane axis: (N, H, W*C).
    x_f = jnp.transpose(x_nchw, (0, 2, 3, 1)).reshape(N, H, WC)

    m1 = _banded_conv_matrix(jnp.transpose(w1_oihw, (2, 3, 1, 0)), W).astype(MXU_DTYPE)
    m2 = _banded_conv_matrix(jnp.transpose(w2_oihw, (2, 3, 1, 0)), W).astype(MXU_DTYPE)

    nb = _pick_block_n(N, H)
    grid_n = N // nb

    cparams = pltpu.CompilerParams(
        dimension_semantics=("parallel",),          # 2 TensorCores on v7x
        vmem_limit_bytes=_pick_vmem_limit(),        # generation-aware budget
    )

    act_spec = pl.BlockSpec((nb, H, WC), lambda g: (g, 0, 0))
    mat_spec = pl.BlockSpec(m1.shape, lambda g: (0, 0, 0))
    vec_spec = pl.BlockSpec((1, WC), lambda g: (0, 0))
    st_spec = pl.BlockSpec((None, 8, WC), lambda g: (g, 0, 0))

    act_shape = jax.ShapeDtypeStruct((N, H, WC), jnp.float32)
    st_shape = jax.ShapeDtypeStruct((grid_n, 8, WC), jnp.float32)

    # Pass 1: raw conv1 + per-block partial BN stats.
    y1_raw, st1 = pl.pallas_call(
        _conv1_kernel,
        grid_spec=pltpu.PrefetchScalarGridSpec(
            num_scalar_prefetch=0, grid=(grid_n,),
            in_specs=[act_spec, mat_spec],
            out_specs=[act_spec, st_spec]),
        out_shape=(act_shape, st_shape),
        compiler_params=cparams,
    )(x_f, m1)

    sc1, sh1 = _bn_lane_affine(st1, gamma1, beta1, W, C, count)

    # Pass 2: BN1 affine + ReLU + raw conv2 + partial stats.
    y2_raw, st2 = pl.pallas_call(
        _conv2_kernel,
        grid_spec=pltpu.PrefetchScalarGridSpec(
            num_scalar_prefetch=0, grid=(grid_n,),
            in_specs=[act_spec, mat_spec, vec_spec, vec_spec],
            out_specs=[act_spec, st_spec]),
        out_shape=(act_shape, st_shape),
        compiler_params=cparams,
    )(y1_raw, m2, sc1, sh1)

    sc2, sh2 = _bn_lane_affine(st2, gamma2, beta2, W, C, count)

    # Epilogue: BN2 affine + residual add + ReLU — pure pointwise and HBM-
    # bound, so leave it to XLA to fuse with the trailing layout transpose.
    out_f = jnp.maximum(y2_raw * sc2[None] + sh2[None] + x_f, 0.0)
    return jnp.transpose(out_f.reshape(N, H, W, C), (0, 3, 1, 2))


# ---------------------------------------------------------------------------
# Pure-JAX reference (PyTorch train-mode BN semantics)
# ---------------------------------------------------------------------------
def _reference(x_nchw, w1_oihw, w2_oihw, gamma1, beta1, gamma2, beta2):
    def conv(x, w):
        return jax.lax.conv_general_dilated(
            x, w, window_strides=(1, 1), padding=((1, 1), (1, 1)),
            dimension_numbers=("NCHW", "OIHW", "NCHW"))

    def bn(y, g, b):
        mean = jnp.mean(y, axis=(0, 2, 3), keepdims=True)
        var = jnp.mean((y - mean) ** 2, axis=(0, 2, 3), keepdims=True)
        return (g.reshape(1, -1, 1, 1) * (y - mean) * jax.lax.rsqrt(var + EPS)
                + b.reshape(1, -1, 1, 1))

    y = jax.nn.relu(bn(conv(x_nchw, w1_oihw), gamma1, beta1))
    y = bn(conv(y, w2_oihw), gamma2, beta2)
    return jax.nn.relu(y + x_nchw)


if __name__ == "__main__":
    N, C, H, W = 2, 8, 16, 16          # in_channels == out_channels == 8; W*C = 128
    key = jax.random.PRNGKey(0)
    kx_, kw1, kw2, kg1, kb1, kg2, kb2 = jax.random.split(key, 7)

    x = jax.random.normal(kx_, (N, C, H, W), jnp.float32)
    w1 = 0.1 * jax.random.normal(kw1, (C, C, 3, 3), jnp.float32)   # OIHW, bias=False
    w2 = 0.1 * jax.random.normal(kw2, (C, C, 3, 3), jnp.float32)
    gamma1 = 1.0 + 0.1 * jax.random.normal(kg1, (C,), jnp.float32)
    beta1 = 0.1 * jax.random.normal(kb1, (C,), jnp.float32)
    gamma2 = 1.0 + 0.1 * jax.random.normal(kg2, (C,), jnp.float32)
    beta2 = 0.1 * jax.random.normal(kb2, (C,), jnp.float32)

    out = jax.jit(non_bt_forward)(x, w1, w2, gamma1, beta1, gamma2, beta2)
    out = jax.block_until_ready(out)

    ref = _reference(x, w1, w2, gamma1, beta1, gamma2, beta2)
    assert out.shape == (N, C, H, W)
    max_err = float(jnp.max(jnp.abs(out - ref)))
    assert jnp.allclose(out, ref, atol=1e-4, rtol=1e-4), max_err

    print("KERNEL_OK")
</pallas_src>

<mosaic_0001>
module attributes {stable_mosaic.version = 11 : i64} {
  func.func @_conv1_kernel(%arg0: i32, %arg1: memref<1x16x128xf32, #tpu.memory_space<vmem>>, %arg2: memref<3x128x128xf32, #tpu.memory_space<vmem>>, %arg3: memref<1x16x128xf32, #tpu.memory_space<vmem>>, %arg4: memref<1x8x128xf32, #tpu.memory_space<vmem>>) attributes {dimension_semantics = [#tpu.dimension_semantics<parallel>], iteration_bounds = array<i64: 2>, scalar_prefetch = 0 : i64, scratch_operands = 0 : i64, tpu.core_type = #tpu.core_type<tc>, window_params = [{transform_indices = @transform_0, window_bounds = array<i64: 1, 16, 128>}, {pipeline_mode = #tpu.pipeline_mode<synchronous>, transform_indices = @transform_1, window_bounds = array<i64: 3, 128, 128>}, {transform_indices = @transform_2, window_bounds = array<i64: 1, 16, 128>}, {transform_indices = @transform_3, window_bounds = array<i64: 1, 8, 128>}]} {
    %c0 = arith.constant 0 : index
    %c0_0 = arith.constant 0 : index
    %c0_1 = arith.constant 0 : index
    %0 = vector.load %arg1[%c0, %c0_0, %c0_1] : memref<1x16x128xf32, #tpu.memory_space<vmem>>, vector<1x16x128xf32>
    %1 = vector.shape_cast %0 : vector<1x16x128xf32> to vector<16x128xf32>
    %c0_2 = arith.constant 0 : index
    %c0_3 = arith.constant 0 : index
    %c0_4 = arith.constant 0 : index
    %2 = vector.load %arg2[%c0_2, %c0_3, %c0_4] : memref<3x128x128xf32, #tpu.memory_space<vmem>>, vector<1x128x128xf32>
    %3 = vector.shape_cast %2 : vector<1x128x128xf32> to vector<128x128xf32>
    %cst = arith.constant dense<0.000000e+00> : vector<16x128xf32>
    %4 = tpu.matmul %1, %3, %cst {dimension_numbers = #tpu.dot_dimension_numbers<[1], [0], [0], [1], [0, 0, 1, 1], [], []>} : vector<16x128xf32>, vector<128x128xf32>, vector<16x128xf32> -> vector<16x128xf32>
    %c1 = arith.constant 1 : index
    %c0_5 = arith.constant 0 : index
    %c0_6 = arith.constant 0 : index
    %5 = vector.load %arg2[%c1, %c0_5, %c0_6] : memref<3x128x128xf32, #tpu.memory_space<vmem>>, vector<1x128x128xf32>
    %6 = vector.shape_cast %5 : vector<1x128x128xf32> to vector<128x128xf32>
    %cst_7 = arith.constant dense<0.000000e+00> : vector<16x128xf32>
    %7 = tpu.matmul %1, %6, %cst_7 {dimension_numbers = #tpu.dot_dimension_numbers<[1], [0], [0], [1], [0, 0, 1, 1], [], []>} : vector<16x128xf32>, vector<128x128xf32>, vector<16x128xf32> -> vector<16x128xf32>
    %c2 = arith.constant 2 : index
    %c0_8 = arith.constant 0 : index
    %c0_9 = arith.constant 0 : index
    %8 = vector.load %arg2[%c2, %c0_8, %c0_9] : memref<3x128x128xf32, #tpu.memory_space<vmem>>, vector<1x128x128xf32>
    %9 = vector.shape_cast %8 : vector<1x128x128xf32> to vector<128x128xf32>
    %cst_10 = arith.constant dense<0.000000e+00> : vector<16x128xf32>
    %10 = tpu.matmul %1, %9, %cst_10 {dimension_numbers = #tpu.dot_dimension_numbers<[1], [0], [0], [1], [0, 0, 1, 1], [], []>} : vector<16x128xf32>, vector<128x128xf32>, vector<16x128xf32> -> vector<16x128xf32>
    %11 = tpu.iota {dimensions = array<i32: 1>} : vector<1x16x128xi32>
    %12 = vector.shape_cast %11 : vector<1x16x128xi32> to vector<16x128xi32>
    %c0_i32 = arith.constant 0 : i32
    %13 = vector.broadcast %c0_i32 : i32 to vector<16x128xi32>
    %14 = arith.cmpi eq, %12, %13 : vector<16x128xi32>
    %c1_i32 = arith.constant 1 : i32
    %15 = tpu.dynamic_rotate %4 by %c1_i32 dim 0 : vector<16x128xf32>, i32 -> vector<16x128xf32>
    %cst_11 = arith.constant 0.000000e+00 : f32
    %16 = vector.broadcast %cst_11 : f32 to vector<16x128xf32>
    %17 = arith.select %14, %16, %15 : vector<16x128xi1>, vector<16x128xf32>
    %18 = arith.addf %7, %17 : vector<16x128xf32>
    %c15_i32 = arith.constant 15 : i32
    %19 = vector.broadcast %c15_i32 : i32 to vector<16x128xi32>
    %20 = arith.cmpi eq, %12, %19 : vector<16x128xi32>
    %c15_i32_12 = arith.constant 15 : i32
    %21 = tpu.dynamic_rotate %10 by %c15_i32_12 dim 0 : vector<16x128xf32>, i32 -> vector<16x128xf32>
    %cst_13 = arith.constant 0.000000e+00 : f32
    %22 = vector.broadcast %cst_13 : f32 to vector<16x128xf32>
    %23 = arith.select %20, %22, %21 : vector<16x128xi1>, vector<16x128xf32>
    %24 = arith.addf %18, %23 : vector<16x128xf32>
    %25 = vector.shape_cast %24 : vector<16x128xf32> to vector<1x16x128xf32>
    %c0_14 = arith.constant 0 : index
    %c0_15 = arith.constant 0 : index
    %c0_16 = arith.constant 0 : index
    %26 = vector.load %arg3[%c0_14, %c0_15, %c0_16] : memref<1x16x128xf32, #tpu.memory_space<vmem>>, vector<1x16x128xf32>
    tpu.vector_store %arg3[%c0_14, %c0_15, %c0_16], %25 {strides = array<i32>} : memref<1x16x128xf32, #tpu.memory_space<vmem>>, vector<1x16x128xf32>,
    %cst_17 = arith.constant dense<0.000000e+00> : vector<128xf32>
    %27 = vector.multi_reduction <add>, %24, %cst_17 [0] : vector<16x128xf32> to vector<128xf32>
    %28 = vector.shape_cast %27 : vector<128xf32> to vector<1x128xf32>
    %29 = arith.mulf %24, %24 : vector<16x128xf32>
    %cst_18 = arith.constant dense<0.000000e+00> : vector<128xf32>
    %30 = vector.multi_reduction <add>, %29, %cst_18 [0] : vector<16x128xf32> to vector<128xf32>
    %31 = vector.shape_cast %30 : vector<128xf32> to vector<1x128xf32>
    %cst_19 = arith.constant 0.000000e+00 : f32
    %32 = vector.broadcast %cst_19 : f32 to vector<6x128xf32>
    %33 = tpu.concatenate %28, %31, %32 in 0 : vector<1x128xf32>, vector<1x128xf32>, vector<6x128xf32> -> vector<8x128xf32>
    %c0_20 = arith.constant 0 : index
    %c0_21 = arith.constant 0 : index
    %c0_22 = arith.constant 0 : index
    %34 = vector.load %arg4[%c0_20, %c0_21, %c0_22] : memref<1x8x128xf32, #tpu.memory_space<vmem>>, vector<1x8x128xf32>
    %35 = vector.shape_cast %34 : vector<1x8x128xf32> to vector<8x128xf32>
    %36 = vector.shape_cast %33 : vector<8x128xf32> to vector<1x8x128xf32>
    tpu.vector_store %arg4[%c0_20, %c0_21, %c0_22], %36 {strides = array<i32>} : memref<1x8x128xf32, #tpu.memory_space<vmem>>, vector<1x8x128xf32>,
    return
  }
  func.func @transform_0(%arg0: i32) -> (i32, i32, i32) {
    %c0_i32 = arith.constant 0 : i32
    %c0_i32_0 = arith.constant 0 : i32
    %c0_i32_1 = arith.constant 0 : i32
    return %arg0, %c0_i32, %c0_i32_0 : i32, i32, i32
  }
  func.func @transform_1(%arg0: i32) -> (i32, i32, i32) {
    %c0_i32 = arith.constant 0 : i32
    %c0_i32_0 = arith.constant 0 : i32
    %c0_i32_1 = arith.constant 0 : i32
    %c0_i32_2 = arith.constant 0 : i32
    return %c0_i32, %c0_i32_0, %c0_i32_1 : i32, i32, i32
  }
  func.func @transform_2(%arg0: i32) -> (i32, i32, i32) {
    %c0_i32 = arith.constant 0 : i32
    %c0_i32_0 = arith.constant 0 : i32
    %c0_i32_1 = arith.constant 0 : i32
    return %arg0, %c0_i32, %c0_i32_0 : i32, i32, i32
  }
  func.func @transform_3(%arg0: i32) -> (i32, i32, i32) {
    %c0_i32 = arith.constant 0 : i32
    %c0_i32_0 = arith.constant 0 : i32
    %c0_i32_1 = arith.constant 0 : i32
    return %arg0, %c0_i32, %c0_i32_0 : i32, i32, i32
  }
}

module attributes {stable_mosaic.version = 11 : i64} {
  func.func @_conv2_kernel(%arg0: i32, %arg1: memref<1x16x128xf32, #tpu.memory_space<vmem>>, %arg2: memref<3x128x128xf32, #tpu.memory_space<vmem>>, %arg3: memref<1x128xf32, #tpu.memory_space<vmem>>, %arg4: memref<1x128xf32, #tpu.memory_space<vmem>>, %arg5: memref<1x16x128xf32, #tpu.memory_space<vmem>>, %arg6: memref<1x8x128xf32, #tpu.memory_space<vmem>>) attributes {dimension_semantics = [#tpu.dimension_semantics<parallel>], iteration_bounds = array<i64: 2>, scalar_prefetch = 0 : i64, scratch_operands = 0 : i64, tpu.core_type = #tpu.core_type<tc>, window_params = [{transform_indices = @transform_0, window_bounds = array<i64: 1, 16, 128>}, {pipeline_mode = #tpu.pipeline_mode<synchronous>, transform_indices = @transform_1, window_bounds = array<i64: 3, 128, 128>}, {pipeline_mode = #tpu.pipeline_mode<synchronous>, transform_indices = @transform_2, window_bounds = array<i64: 1, 128>}, {pipeline_mode = #tpu.pipeline_mode<synchronous>, transform_indices = @transform_3, window_bounds = array<i64: 1, 128>}, {transform_indices = @transform_4, window_bounds = array<i64: 1, 16, 128>}, {transform_indices = @transform_5, window_bounds = array<i64: 1, 8, 128>}]} {
    %c0 = arith.constant 0 : index
    %c0_0 = arith.constant 0 : index
    %c0_1 = arith.constant 0 : index
    %0 = vector.load %arg1[%c0, %c0_0, %c0_1] : memref<1x16x128xf32, #tpu.memory_space<vmem>>, vector<1x16x128xf32>
    %1 = vector.shape_cast %0 : vector<1x16x128xf32> to vector<16x128xf32>
    %c0_2 = arith.constant 0 : index
    %c0_3 = arith.constant 0 : index
    %2 = vector.load %arg3[%c0_2, %c0_3] : memref<1x128xf32, #tpu.memory_space<vmem>>, vector<1x128xf32>
    %3 = vector.broadcast %2 : vector<1x128xf32> to vector<16x128xf32>
    %4 = arith.mulf %1, %3 : vector<16x128xf32>
    %c0_4 = arith.constant 0 : index
    %c0_5 = arith.constant 0 : index
    %5 = vector.load %arg4[%c0_4, %c0_5] : memref<1x128xf32, #tpu.memory_space<vmem>>, vector<1x128xf32>
    %6 = vector.broadcast %5 : vector<1x128xf32> to vector<16x128xf32>
    %7 = arith.addf %4, %6 : vector<16x128xf32>
    %cst = arith.constant 0.000000e+00 : f32
    %8 = vector.broadcast %cst : f32 to vector<16x128xf32>
    %9 = arith.maximumf %7, %8 : vector<16x128xf32>
    %c0_6 = arith.constant 0 : index
    %c0_7 = arith.constant 0 : index
    %c0_8 = arith.constant 0 : index
    %10 = vector.load %arg2[%c0_6, %c0_7, %c0_8] : memref<3x128x128xf32, #tpu.memory_space<vmem>>, vector<1x128x128xf32>
    %11 = vector.shape_cast %10 : vector<1x128x128xf32> to vector<128x128xf32>
    %cst_9 = arith.constant dense<0.000000e+00> : vector<16x128xf32>
    %12 = tpu.matmul %9, %11, %cst_9 {dimension_numbers = #tpu.dot_dimension_numbers<[1], [0], [0], [1], [0, 0, 1, 1], [], []>} : vector<16x128xf32>, vector<128x128xf32>, vector<16x128xf32> -> vector<16x128xf32>
    %c1 = arith.constant 1 : index
    %c0_10 = arith.constant 0 : index
    %c0_11 = arith.constant 0 : index
    %13 = vector.load %arg2[%c1, %c0_10, %c0_11] : memref<3x128x128xf32, #tpu.memory_space<vmem>>, vector<1x128x128xf32>
    %14 = vector.shape_cast %13 : vector<1x128x128xf32> to vector<128x128xf32>
    %cst_12 = arith.constant dense<0.000000e+00> : vector<16x128xf32>
    %15 = tpu.matmul %9, %14, %cst_12 {dimension_numbers = #tpu.dot_dimension_numbers<[1], [0], [0], [1], [0, 0, 1, 1], [], []>} : vector<16x128xf32>, vector<128x128xf32>, vector<16x128xf32> -> vector<16x128xf32>
    %c2 = arith.constant 2 : index
    %c0_13 = arith.constant 0 : index
    %c0_14 = arith.constant 0 : index
    %16 = vector.load %arg2[%c2, %c0_13, %c0_14] : memref<3x128x128xf32, #tpu.memory_space<vmem>>, vector<1x128x128xf32>
    %17 = vector.shape_cast %16 : vector<1x128x128xf32> to vector<128x128xf32>
    %cst_15 = arith.constant dense<0.000000e+00> : vector<16x128xf32>
    %18 = tpu.matmul %9, %17, %cst_15 {dimension_numbers = #tpu.dot_dimension_numbers<[1], [0], [0], [1], [0, 0, 1, 1], [], []>} : vector<16x128xf32>, vector<128x128xf32>, vector<16x128xf32> -> vector<16x128xf32>
    %19 = tpu.iota {dimensions = array<i32: 1>} : vector<1x16x128xi32>
    %20 = vector.shape_cast %19 : vector<1x16x128xi32> to vector<16x128xi32>
    %c0_i32 = arith.constant 0 : i32
    %21 = vector.broadcast %c0_i32 : i32 to vector<16x128xi32>
    %22 = arith.cmpi eq, %20, %21 : vector<16x128xi32>
    %c1_i32 = arith.constant 1 : i32
    %23 = tpu.dynamic_rotate %12 by %c1_i32 dim 0 : vector<16x128xf32>, i32 -> vector<16x128xf32>
    %cst_16 = arith.constant 0.000000e+00 : f32
    %24 = vector.broadcast %cst_16 : f32 to vector<16x128xf32>
    %25 = arith.select %22, %24, %23 : vector<16x128xi1>, vector<16x128xf32>
    %26 = arith.addf %15, %25 : vector<16x128xf32>
    %c15_i32 = arith.constant 15 : i32
    %27 = vector.broadcast %c15_i32 : i32 to vector<16x128xi32>
    %28 = arith.cmpi eq, %20, %27 : vector<16x128xi32>
    %c15_i32_17 = arith.constant 15 : i32
    %29 = tpu.dynamic_rotate %18 by %c15_i32_17 dim 0 : vector<16x128xf32>, i32 -> vector<16x128xf32>
    %cst_18 = arith.constant 0.000000e+00 : f32
    %30 = vector.broadcast %cst_18 : f32 to vector<16x128xf32>
    %31 = arith.select %28, %30, %29 : vector<16x128xi1>, vector<16x128xf32>
    %32 = arith.addf %26, %31 : vector<16x128xf32>
    %33 = vector.shape_cast %32 : vector<16x128xf32> to vector<1x16x128xf32>
    %c0_19 = arith.constant 0 : index
    %c0_20 = arith.constant 0 : index
    %c0_21 = arith.constant 0 : index
    %34 = vector.load %arg5[%c0_19, %c0_20, %c0_21] : memref<1x16x128xf32, #tpu.memory_space<vmem>>, vector<1x16x128xf32>
    tpu.vector_store %arg5[%c0_19, %c0_20, %c0_21], %33 {strides = array<i32>} : memref<1x16x128xf32, #tpu.memory_space<vmem>>, vector<1x16x128xf32>,
    %cst_22 = arith.constant dense<0.000000e+00> : vector<128xf32>
    %35 = vector.multi_reduction <add>, %32, %cst_22 [0] : vector<16x128xf32> to vector<128xf32>
    %36 = vector.shape_cast %35 : vector<128xf32> to vector<1x128xf32>
    %37 = arith.mulf %32, %32 : vector<16x128xf32>
    %cst_23 = arith.constant dense<0.000000e+00> : vector<128xf32>
    %38 = vector.multi_reduction <add>, %37, %cst_23 [0] : vector<16x128xf32> to vector<128xf32>
    %39 = vector.shape_cast %38 : vector<128xf32> to vector<1x128xf32>
    %cst_24 = arith.constant 0.000000e+00 : f32
    %40 = vector.broadcast %cst_24 : f32 to vector<6x128xf32>
    %41 = tpu.concatenate %36, %39, %40 in 0 : vector<1x128xf32>, vector<1x128xf32>, vector<6x128xf32> -> vector<8x128xf32>
    %c0_25 = arith.constant 0 : index
    %c0_26 = arith.constant 0 : index
    %c0_27 = arith.constant 0 : index
    %42 = vector.load %arg6[%c0_25, %c0_26, %c0_27] : memref<1x8x128xf32, #tpu.memory_space<vmem>>, vector<1x8x128xf32>
    %43 = vector.shape_cast %42 : vector<1x8x128xf32> to vector<8x128xf32>
    %44 = vector.shape_cast %41 : vector<8x128xf32> to vector<1x8x128xf32>
    tpu.vector_store %arg6[%c0_25, %c0_26, %c0_27], %44 {strides = array<i32>} : memref<1x8x128xf32, #tpu.memory_space<vmem>>, vector<1x8x128xf32>,
    return
  }
  func.func @transform_0(%arg0: i32) -> (i32, i32, i32) {
    %c0_i32 = arith.constant 0 : i32
    %c0_i32_0 = arith.constant 0 : i32
    %c0_i32_1 = arith.constant 0 : i32
    return %arg0, %c0_i32, %c0_i32_0 : i32, i32, i32
  }
  func.func @transform_1(%arg0: i32) -> (i32, i32, i32) {
    %c0_i32 = arith.constant 0 : i32
    %c0_i32_0 = arith.constant 0 : i32
    %c0_i32_1 = arith.constant 0 : i32
    %c0_i32_2 = arith.constant 0 : i32
    return %c0_i32, %c0_i32_0, %c0_i32_1 : i32, i32, i32
  }
  func.func @transform_2(%arg0: i32) -> (i32, i32) {
    %c0_i32 = arith.constant 0 : i32
    %c0_i32_0 = arith.constant 0 : i32
    %c0_i32_1 = arith.constant 0 : i32
    return %c0_i32, %c0_i32_0 : i32, i32
  }
  func.func @transform_3(%arg0: i32) -> (i32, i32) {
    %c0_i32 = arith.constant 0 : i32
    %c0_i32_0 = arith.constant 0 : i32
    %c0_i32_1 = arith.constant 0 : i32
    return %c0_i32, %c0_i32_0 : i32, i32
  }
  func.func @transform_4(%arg0: i32) -> (i32, i32, i32) {
    %c0_i32 = arith.constant 0 : i32
    %c0_i32_0 = arith.constant 0 : i32
    %c0_i32_1 = arith.constant 0 : i32
    return %arg0, %c0_i32, %c0_i32_0 : i32, i32, i32
  }
  func.func @transform_5(%arg0: i32) -> (i32, i32, i32) {
    %c0_i32 = arith.constant 0 : i32
    %c0_i32_0 = arith.constant 0 : i32
    %c0_i32_1 = arith.constant 0 : i32
    return %arg0, %c0_i32, %c0_i32_0 : i32, i32, i32
  }
}

</mosaic_0001>

<bundles_post_ra>
// kernel: tile.23
= control target key start
LH: loop header
LB: loop body
LE: loop exit
PB: predicated region body
PF: predicated region fallthrough
CT: control target
= control target key end

     0   :  { %s28_s0 = inlined_call_operand.vmem [shape: f32[8], index: 0, kind: input, shape index: {}]   ;;  %s29_s1 = inlined_call_operand.vmem [shape: f32[16,8], index: 1, kind: output, shape index: {}]  }
   0x1   :  { %v4_v0 = vld [vmem:[%s28_s0] ss:$0 sm:$0xff] }
   0x2   :  { %5 = vst [vmem:[%s29_s1] sm:$0xff] %v4_v0 }
   0x3   :  { %8 = vst [vmem:[%s29_s1 + $0x8] sm:$0xff] %v4_v0 }

// kernel: tile.24
= control target key start
LH: loop header
LB: loop body
LE: loop exit
PB: predicated region body
PF: predicated region fallthrough
CT: control target
= control target key end

     0   :  { %s131_s10 = smov 120   ;;  %s132_s11 = smov 104   ;;  %vm3_vm0 = vcmask 64512   ;;  %vm9_vm1 = vcmask 1048512   ;;  %vm15_vm2 = vcmask 982912   ;;  %vm21_vm3 = vcmask 917312   ;;  %s207_s0 = inlined_call_operand.vmem [shape: f32[16,8], index: 0, kind: input, shape index: {}]   ;;  %s208_s1 = inlined_call_operand.vmem [shape: f32[1,128], index: 1, kind: output, shape index: {}]  }
   0x1   :  { %v101_v0 = vld [vmem:[%s207_s0 + $0xf] sm:$0x1]   ;;  %v103_v1 = vld [vmem:[%s207_s0 + $0xd] sm:$0x1]   ;;  %v105_v2 = vld [vmem:[%s207_s0 + $0xb] sm:$0x1]  }
   0x2   :  { %7 = vrot.lane.b32.xlu0 %v101_v0, %s131_s10  ;;  %19 = vrot.lane.b32.xlu1 %v103_v1, %s132_s11  ;;  %s133_s14 = smov 88   ;;  %v102_v3 = vld [vmem:[%s207_s0 + $0xe] sm:$0x1]   ;;  %v104_v4 = vld [vmem:[%s207_s0 + $0xc] sm:$0x1]   ;;  %s134_s19 = smov 112  }
   0x3   :  { %31 = vrot.lane.b32.xlu2 %v105_v2, %s133_s14  ;;  %s135_s20 = smov 96   ;;  %v106_v5 = vld [vmem:[%s207_s0 + $0xa] sm:$0x1]   ;;  %s136_s23 = smov 80   ;;  %v107_v6 = vld [vmem:[%s207_s0 + $0x9] sm:$0x1]  }
   0x4   :  { %v108_v7 = vld [vmem:[%s207_s0 + $0x8] sm:$0x1]   ;;  %s137_s28 = smov 72   ;;  %s138_s29 = smov 64   ;;  %v109_v8 = vld [vmem:[%s207_s0 + $0x7] sm:$0x1]  }
   0x5   :  { %s139_s3 = smov 56   ;;  %v110_v9 = vld [vmem:[%s207_s0 + $0x6] sm:$0x1]   ;;  %v111_v10 = vld [vmem:[%s207_s0 + $0x5] sm:$0x1]   ;;  %s140_s8 = smov 48  }
   0x6   :  { %s141_s9 = smov 40   ;;  %v112_v11 = vld [vmem:[%s207_s0 + $0x4] sm:$0x1]   ;;  %s142_s12 = smov 32   ;;  %v113_v12 = vld [vmem:[%s207_s0 + $0x3] sm:$0x1]  }
   0x7   :  { %v114_v13 = vld [vmem:[%s207_s0 + $0x2] sm:$0x1]   ;;  %s143_s17 = smov 24   ;;  %s144_s18 = smov 16   ;;  %v115_v14 = vld [vmem:[%s207_s0 + $0x1] sm:$0x1]  }
   0x8   :  { %s145_s21 = smov 8   ;;  %v2_v15 = vld [vmem:[%s207_s0] sm:$0x1]   ;;  %vm27_vm4 = vcmask 851712   ;;  %vm33_vm5 = vcmask 786112   ;;  %vm39_vm6 = vcmask 720512  }
   0x9   :  { %4 = vst.msk [vmem:[#allocation0] sm:$0x1] %vm3_vm0, %v2_v15   ;;  %vm45_vm7 = vcmask 654912   ;;  %vm51_vm8 = vcmask 589312   ;;  %vm57_vm9 = vcmask 523712   ;;  %vm63_vm10 = vcmask 458112  }
   0xa   :  { %13 = vrot.lane.b32.xlu0 %v102_v3, %s134_s19  ;;  %25 = vrot.lane.b32.xlu1 %v104_v4, %s135_s20  ;;  %vm69_vm11 = vcmask 392512   ;;  %vm75_vm12 = vcmask 326912   ;;  %vm81_vm13 = vcmask 261312   ;;  %vm87_vm14 = vcmask 195712  }
   0xb   :  { %37 = vrot.lane.b32.xlu2 %v106_v5, %s136_s23  ;;  %vm93_vm15 = vcmask 130112  }
  0x12   :  { %43 = vrot.lane.b32.xlu0 %v107_v6, %s137_s28  ;;  %49 = vrot.lane.b32.xlu1 %v108_v7, %s138_s29 }
  0x13   :  { %55 = vrot.lane.b32.xlu2 %v109_v8, %s139_s3 }
  0x1a   :  { %61 = vrot.lane.b32.xlu0 %v110_v9, %s140_s8  ;;  %67 = vrot.lane.b32.xlu1 %v111_v10, %s141_s9 }
  0x1b   :  { %73 = vrot.lane.b32.xlu2 %v112_v11, %s142_s12 }
  0x22   :  { %79 = vrot.lane.b32.xlu0 %v113_v12, %s143_s17  ;;  %85 = vrot.lane.b32.xlu1 %v114_v13, %s144_s18 }
  0x23   :  { %91 = vrot.lane.b32.xlu2 %v115_v14, %s145_s21 }
  0x5d   :  { %v32_v16 = vpop.permute.xlu2 %31  }
  0x65   :  { %v38_v17 = vpop.permute.xlu2 %37  }
  0x6d   :  { %v56_v18 = vpop.permute.xlu2 %55  }
  0x74   :  { %v8_v19 = vpop.permute.xlu0 %7   ;;  %v20_v20 = vpop.permute.xlu1 %19  }
  0x75   :  { %10 = vst.msk [vmem:[#allocation0] sm:$0x1] %vm9_vm1, %v8_v19   ;;  %v74_v21 = vpop.permute.xlu2 %73  }
  0x7c   :  { %v14_v22 = vpop.permute.xlu0 %13   ;;  %v26_v23 = vpop.permute.xlu1 %25  }
  0x7d   :  { %16 = vst.msk [vmem:[#allocation0] sm:$0x1] %vm15_vm2, %v14_v22   ;;  %v92_v24 = vpop.permute.xlu2 %91  }
  0x7e   :  { %22 = vst.msk [vmem:[#allocation0] sm:$0x1] %vm21_vm3, %v20_v20  }
  0x7f   :  { %28 = vst.msk [vmem:[#allocation0] sm:$0x1] %vm27_vm4, %v26_v23  }
  0x80   :  { %34 = vst.msk [vmem:[#allocation0] sm:$0x1] %vm33_vm5, %v32_v16  }
  0x81   :  { %40 = vst.msk [vmem:[#allocation0] sm:$0x1] %vm39_vm6, %v38_v17  }
  0x84   :  { %v44_v25 = vpop.permute.xlu0 %43   ;;  %v50_v26 = vpop.permute.xlu1 %49  }
  0x85   :  { %46 = vst.msk [vmem:[#allocation0] sm:$0x1] %vm45_vm7, %v44_v25  }
  0x86   :  { %52 = vst.msk [vmem:[#allocation0] sm:$0x1] %vm51_vm8, %v50_v26  }
  0x87   :  { %58 = vst.msk [vmem:[#allocation0] sm:$0x1] %vm57_vm9, %v56_v18  }
  0x8c   :  { %v62_v27 = vpop.permute.xlu0 %61   ;;  %v68_v28 = vpop.permute.xlu1 %67  }
  0x8d   :  { %64 = vst.msk [vmem:[#allocation0] sm:$0x1] %vm63_vm10, %v62_v27  }
  0x8e   :  { %70 = vst.msk [vmem:[#allocation0] sm:$0x1] %vm69_vm11, %v68_v28  }
  0x8f   :  { %76 = vst.msk [vmem:[#allocation0] sm:$0x1] %vm75_vm12, %v74_v21  }
  0x94   :  { %v80_v29 = vpop.permute.xlu0 %79   ;;  %v86_v30 = vpop.permute.xlu1 %85  }
  0x95   :  { %82 = vst.msk [vmem:[#allocation0] sm:$0x1] %vm81_vm13, %v80_v29  }
  0x96   :  { %88 = vst.msk [vmem:[#allocation0] sm:$0x1] %vm87_vm14, %v86_v30  }
  0x97   :  { %94 = vst.msk [vmem:[#allocation0] sm:$0x1] %vm93_vm15, %v92_v24  }
  0x9e   :  { %v97_v31 = vld [vmem:[#allocation0] sm:$0x1] }
  0x9f   :  { %100 = vst [vmem:[%s208_s1] sm:$0x1] %v97_v31 }

// kernel: non_bt_forward.2
= control target key start
LH: loop header
LB: loop body
LE: loop exit
PB: predicated region body
PF: predicated region fallthrough
CT: control target
= control target key end

     0   :  { %s533_s12 = smov 0   ;;  %s715_s0 = inlined_call_operand.vmem [shape: f32[2,16,128], index: 0, kind: input, shape index: {}]   ;;  %s716_s1 = inlined_call_operand.vmem [shape: f32[3,128,128], index: 1, kind: input, shape index: {}]   ;;  %s717_s2 = inlined_call_operand.vmem [shape: f32[2,16,128], index: 2, kind: output, shape index: {0}]   ;;  %s718_s3 = inlined_call_operand.vmem [shape: f32[2,8,128], index: 3, kind: output, shape index: {1}]  }
   0x1 LB: > { %s435_s13 = sadd.s32 4294967295, %s511_s12   ;;  %p439_p0 = scmp.ge.s32.totalorder %s511_s12, 1  ;;  %s511_s12 = sphi %s533_s12, %s14_s12  }
   0x2   : > { %p140_p1 = scmp.lt.s32.totalorder %s511_s12, 3 }
   0x4   : > { %p141_p2 = pnand %p439_p0, %p140_p1 }
   0x5   : > { %p624_p3 = scmp.lt.s32.totalorder (!%p141_p2), %s435_s13, 1 }
   0x6   : > { %144 = sbr.rel (%p141_p2) target bundleno = 208 (0xd0), region = 28 }
   0xb   : > { %v199_v0 = vld [vmem:[%s716_s1 + $0x78] sm:$0xff]  ;;  %v198_v3 = vld [vmem:[%s716_s1 + $0x70] sm:$0xff]  ;;  %v197_v6 = vld [vmem:[%s716_s1 + $0x68] sm:$0xff]  ;;  %s721_s13 = smov (!%p624_p3, %s435_s13), 1  ;;  %v280_v50 = vlaneseq  ;;  %vm344_vm4 = vcmask 1040384   ;;  %vm346_vm5 = vcmask 1041408  }
   0xc   : > { %v476_v1 = vld [vmem:[%s716_s1 + $0x178] sm:$0xff]  ;;  %481 = vmatpush.msra.mxu3 %v199_v0  ;;  %v475_v4 = vld [vmem:[%s716_s1 + $0x170] sm:$0xff]  ;;  %v474_v7 = vld [vmem:[%s716_s1 + $0x168] sm:$0xff]  ;;  %200 = vmatpush.msra.mxu0 %v199_v0  ;;  %s479_s18 = sshll.u32 %s721_s13, 4 }
   0xd   : > { %v460_v2 = vld [vmem:[%s716_s1 + $0xf8] sm:$0xff]  ;;  %257 = vmatpush.msra.mxu1 %v476_v1  ;;  %v459_v5 = vld [vmem:[%s716_s1 + $0xf0] sm:$0xff]  ;;  %v458_v8 = vld [vmem:[%s716_s1 + $0xe8] sm:$0xff]  ;;  %s172_s4 = scalar_lea.vmem %s715_s0, %s479_s18  ;;  %v281_v52 = vshrl.u32 %v280_v50, 7  ;;  %s177_s17 = scalar_lea.vmem %s717_s2, %s479_s18 }
   0xe   : > { %292 = vmatpush.msra.mxu2 %v460_v2  ;;  %482 = vmatpush.msra.mxu3 %v198_v3  ;;  %v196_v9 = vld [vmem:[%s716_s1 + $0x60] sm:$0xff]  ;;  %v195_v12 = vld [vmem:[%s716_s1 + $0x58] sm:$0xff]  ;;  %v194_v15 = vld [vmem:[%s716_s1 + $0x50] sm:$0xff]  ;;  %s444_s18 = sshll.u32 %s721_s13, 3 }
   0xf   : > { %258 = vmatpush.msra.mxu1 %v475_v4  ;;  %v473_v10 = vld [vmem:[%s716_s1 + $0x160] sm:$0xff]  ;;  %201 = vmatpush.msra.mxu0 %v198_v3  ;;  %v472_v13 = vld [vmem:[%s716_s1 + $0x158] sm:$0xff]  ;;  %v471_v16 = vld [vmem:[%s716_s1 + $0x150] sm:$0xff]  ;;  %vm287_vm0 = vcmp.lt.s32.totalorder %v281_v52, 1  ;;  %vm283_vm1 = vcmp.eq.s32.totalorder %v281_v52, 0  ;;  %vm319_vm2 = vcmp.lt.s32.totalorder %v281_v52, 7  ;;  %s181_s21 = scalar_lea.vmem %s718_s3, %s444_s18 }
  0x10   : > { %293 = vmatpush.msra.mxu2 %v459_v5  ;;  %483 = vmatpush.msra.mxu3 %v197_v6  ;;  %v457_v11 = vld [vmem:[%s716_s1 + $0xe0] sm:$0xff]  ;;  %v456_v14 = vld [vmem:[%s716_s1 + $0xd8] sm:$0xff]  ;;  %v455_v17 = vld [vmem:[%s716_s1 + $0xd0] sm:$0xff]  ;;  %v282_v63 = vadd.s32 8, %v281_v52 }
  0x11   : > { %259 = vmatpush.msra.mxu1 %v474_v7  ;;  %202 = vmatpush.msra.mxu0 %v197_v6  ;;  %v193_v18 = vld [vmem:[%s716_s1 + $0x48] sm:$0xff]  ;;  %v192_v21 = vld [vmem:[%s716_s1 + $0x40] sm:$0xff]  ;;  %v191_v24 = vld [vmem:[%s716_s1 + $0x38] sm:$0xff] }
  0x12   : > { %294 = vmatpush.msra.mxu2 %v458_v8  ;;  %484 = vmatpush.msra.mxu3 %v196_v9  ;;  %v470_v19 = vld [vmem:[%s716_s1 + $0x148] sm:$0xff]  ;;  %v469_v22 = vld [vmem:[%s716_s1 + $0x140] sm:$0xff]  ;;  %v468_v25 = vld [vmem:[%s716_s1 + $0x138] sm:$0xff]  ;;  %vm316_vm3 = vcmp.eq.s32.totalorder %v282_v63, 15 }
  0x13   : > { %260 = vmatpush.msra.mxu1 %v473_v10  ;;  %203 = vmatpush.msra.mxu0 %v196_v9  ;;  %v454_v20 = vld [vmem:[%s716_s1 + $0xc8] sm:$0xff]  ;;  %v453_v23 = vld [vmem:[%s716_s1 + $0xc0] sm:$0xff]  ;;  %v452_v26 = vld [vmem:[%s716_s1 + $0xb8] sm:$0xff] }
  0x14   : > { %295 = vmatpush.msra.mxu2 %v457_v11  ;;  %485 = vmatpush.msra.mxu3 %v195_v12  ;;  %v190_v27 = vld [vmem:[%s716_s1 + $0x30] sm:$0xff]  ;;  %v189_v30 = vld [vmem:[%s716_s1 + $0x28] sm:$0xff]  ;;  %v188_v33 = vld [vmem:[%s716_s1 + $0x20] sm:$0xff] }
  0x15   : > { %261 = vmatpush.msra.mxu1 %v472_v13  ;;  %204 = vmatpush.msra.mxu0 %v195_v12  ;;  %v467_v28 = vld [vmem:[%s716_s1 + $0x130] sm:$0xff]  ;;  %v466_v31 = vld [vmem:[%s716_s1 + $0x128] sm:$0xff]  ;;  %v465_v34 = vld [vmem:[%s716_s1 + $0x120] sm:$0xff] }
  0x16   : > { %296 = vmatpush.msra.mxu2 %v456_v14  ;;  %486 = vmatpush.msra.mxu3 %v194_v15  ;;  %v451_v29 = vld [vmem:[%s716_s1 + $0xb0] sm:$0xff]  ;;  %v450_v32 = vld [vmem:[%s716_s1 + $0xa8] sm:$0xff]  ;;  %v449_v35 = vld [vmem:[%s716_s1 + $0xa0] sm:$0xff] }
  0x17   : > { %262 = vmatpush.msra.mxu1 %v471_v16  ;;  %205 = vmatpush.msra.mxu0 %v194_v15  ;;  %v187_v36 = vld [vmem:[%s716_s1 + $0x18] sm:$0xff]  ;;  %v186_v39 = vld [vmem:[%s716_s1 + $0x10] sm:$0xff]  ;;  %v185_v42 = vld [vmem:[%s716_s1 + $0x8] sm:$0xff] }
  0x18   : > { %297 = vmatpush.msra.mxu2 %v455_v17  ;;  %487 = vmatpush.msra.mxu3 %v193_v18  ;;  %v464_v37 = vld [vmem:[%s716_s1 + $0x118] sm:$0xff]  ;;  %v463_v40 = vld [vmem:[%s716_s1 + $0x110] sm:$0xff]  ;;  %v462_v43 = vld [vmem:[%s716_s1 + $0x108] sm:$0xff] }
  0x19   : > { %263 = vmatpush.msra.mxu1 %v470_v19  ;;  %206 = vmatpush.msra.mxu0 %v193_v18  ;;  %v448_v38 = vld [vmem:[%s716_s1 + $0x98] sm:$0xff]  ;;  %v447_v41 = vld [vmem:[%s716_s1 + $0x90] sm:$0xff]  ;;  %v446_v44 = vld [vmem:[%s716_s1 + $0x88] sm:$0xff] }
  0x1a   : > { %298 = vmatpush.msra.mxu2 %v454_v20  ;;  %488 = vmatpush.msra.mxu3 %v192_v21  ;;  %v184_v45 = vld [vmem:[%s716_s1] sm:$0xff]  ;;  %v183_v48 = vld [vmem:[%s172_s4 + $0x8] sm:$0xff] }
  0x1b   : > { %264 = vmatpush.msra.mxu1 %v469_v22  ;;  %207 = vmatpush.msra.mxu0 %v192_v21  ;;  %v461_v46 = vld [vmem:[%s716_s1 + $0x100] sm:$0xff] }
  0x1c   : > { %299 = vmatpush.msra.mxu2 %v453_v23  ;;  %489 = vmatpush.msra.mxu3 %v191_v24  ;;  %v445_v47 = vld [vmem:[%s716_s1 + $0x80] sm:$0xff] }
  0x1d   : > { %265 = vmatpush.msra.mxu1 %v468_v25  ;;  %208 = vmatpush.msra.mxu0 %v191_v24  ;;  %v182_v49 = vld [vmem:[%s172_s4] sm:$0xff] }
  0x1e   : > { %300 = vmatpush.msra.mxu2 %v452_v26  ;;  %490 = vmatpush.msra.mxu3 %v190_v27 }
  0x1f   : > { %266 = vmatpush.msra.mxu1 %v467_v28  ;;  %209 = vmatpush.msra.mxu0 %v190_v27 }
  0x20   : > { %301 = vmatpush.msra.mxu2 %v451_v29  ;;  %491 = vmatpush.msra.mxu3 %v189_v30 }
  0x21   : > { %267 = vmatpush.msra.mxu1 %v466_v31  ;;  %210 = vmatpush.msra.mxu0 %v189_v30 }
  0x22   : > { %302 = vmatpush.msra.mxu2 %v450_v32  ;;  %492 = vmatpush.msra.mxu3 %v188_v33 }
  0x23   : > { %268 = vmatpush.msra.mxu1 %v465_v34  ;;  %211 = vmatpush.msra.mxu0 %v188_v33 }
  0x24   : > { %303 = vmatpush.msra.mxu2 %v449_v35  ;;  %493 = vmatpush.msra.mxu3 %v187_v36 }
  0x25   : > { %269 = vmatpush.msra.mxu1 %v464_v37  ;;  %212 = vmatpush.msra.mxu0 %v187_v36 }
  0x26   : > { %304 = vmatpush.msra.mxu2 %v448_v38  ;;  %494 = vmatpush.msra.mxu3 %v186_v39 }
  0x27   : > { %270 = vmatpush.msra.mxu1 %v463_v40  ;;  %213 = vmatpush.msra.mxu0 %v186_v39 }
  0x28   : > { %305 = vmatpush.msra.mxu2 %v447_v41  ;;  %495 = vmatpush.msra.mxu3 %v185_v42 }
  0x29   : > { %271 = vmatpush.msra.mxu1 %v462_v43  ;;  %214 = vmatpush.msra.mxu0 %v185_v42 }
  0x2a   : > { %306 = vmatpush.msra.mxu2 %v446_v44  ;;  %496 = vmatpush.msra.mxu3 %v184_v45 }
  0x2b   : > { %272 = vmatpush.msra.mxu1 %v461_v46  ;;  %219 = vmatmul.f32.vlgmr.msra.gmra.mxu3 %v183_v48 }
  0x2c   : > { %307 = vmatpush.msra.mxu2 %v445_v47  ;;  %273 = vmatmul.f32.vlgmr.msra.gmra.mxu1 %v182_v49 }
  0x2d   : > { %308 = vmatmul.f32.vlgmr.msra.gmra.mxu2 %v182_v49  ;;  %215 = vmatpush.msra.mxu0 %v184_v45 }
  0x2e   : > { %216 = vmatmul.f32.vlgmr.msra.gmra.mxu0 %v182_v49 }
  0x34   : > { %276 = vmatmul.f32.gmra.mxu1 %v183_v48 }
  0x35   : > { %311 = vmatmul.f32.gmra.mxu2 %v183_v48 }
  0xa9   : > { %v274_v51 = vpop.f32.mrf.mxu1 }
  0xaa   : > { %v317_v60 = vrot.slane %v274_v51, 1 }
  0xab   : > { %v217_v53 = vpop.f32.mrf.mxu0 }
  0xac   : > { %v285_v54 = vrot.slane %v217_v53, 7 }
  0xae   : > { %v220_v55 = vpop.f32.mrf.mxu3 }
  0xaf   : > { %v286_v56 = vrot.slane %v220_v55, 7 }
  0xb0   : > { %v309_v57 = vpop.f32.mrf.mxu2 }
  0xb1   : > { %v289_v58 = vsel %vm287_vm0, %v286_v56, %v285_v54  ;;  %v277_v59 = vpop.f32.mrf.mxu1  ;;  %v288_v3 = vsel %vm287_vm0, %v285_v54, %v286_v56 }
  0xb2   : > { %v290_v61 = vsel %vm283_vm1, 0.0, %v289_v58  ;;  %v318_v62 = vrot.slane %v277_v59, 1 }
  0xb3   : > { %v310_v0 = vadd.f32 %v309_v57, %v290_v61 }
  0xb4   : > { %v320_v1 = vsel %vm319_vm2, %v317_v60, %v318_v62  ;;  %v321_v4 = vsel %vm319_vm2, %v318_v62, %v317_v60 }
  0xb5   : > { %v324_v2 = vadd.f32 %v320_v1, %v310_v0  ;;  %v323_v7 = vsel %vm316_vm3, 0.0, %v321_v4 }
  0xb7   : > { %326 = vst [vmem:[%s177_s17] sm:$0xff] %v324_v2  ;;  %v335_v9 = vmul.f32 %v324_v2, %v324_v2 }
  0xb8   : > { %v312_v5 = vpop.f32.mrf.mxu2 }
  0xb9   : > { %v313_v6 = vadd.f32 %v312_v5, %v288_v3 }
  0xbb   : > { %v325_v8 = vadd.f32 %v323_v7, %v313_v6 }
  0xbd   : > { %327 = vst [vmem:[%s177_s17 + $0x8] sm:$0xff] %v325_v8  ;;  %v328_v10 = vadd.f32 %v325_v8, %v324_v2  ;;  %v336_v11 = vmul.f32 %v325_v8, %v325_v8 }
  0xbf   : > { %v329_v12 = vrot.slane %v328_v10, 4  ;;  %v337_v13 = vadd.f32 %v336_v11, %v335_v9 }
  0xc1   : > { %v330_v14 = vadd.f32 %v329_v12, %v328_v10  ;;  %v338_v15 = vrot.slane %v337_v13, 4 }
  0xc3   : > { %v331_v16 = vrot.slane %v330_v14, 2  ;;  %v339_v17 = vadd.f32 %v338_v15, %v337_v13 }
  0xc5   : > { %v332_v18 = vadd.f32 %v331_v16, %v330_v14  ;;  %v340_v19 = vrot.slane %v339_v17, 2 }
  0xc7   : > { %v333_v20 = vrot.slane %v332_v18, 1  ;;  %v341_v21 = vadd.f32 %v340_v19, %v339_v17 }
  0xc9   : > { %v342_v22 = vrot.slane %v341_v21, 1  ;;  %v334_v23 = vadd.f32 %v333_v20, %v332_v18 }
  0xcb   : > { %v343_v24 = vadd.f32 %v342_v22, %v341_v21 }
  0xcd   : > { %v345_v25 = vsel %vm344_vm4, %v334_v23, %v343_v24 }
  0xce   : > { %v347_v26 = vsel %vm346_vm5, %v345_v25, 0.0 }
  0xcf   : > { %348 = vst [vmem:[%s181_s21] sm:$0xff] %v347_v26 }
  0xd0 PF: > { %s14_s12 = sadd.s32 1, %s511_s12  }
  0xd1   : > { %p11_p4 = scmp.ge.s32.totalorder %s14_s12, 4  }
  0xd3   :  { %13 = sbr.rel (!%p11_p4) target bundleno = 1 (0x1), region = 72 }

// kernel: non_bt_forward.3
= control target key start
LH: loop header
LB: loop body
LE: loop exit
PB: predicated region body
PF: predicated region fallthrough
CT: control target
= control target key end

     0   :  { %s613_s18 = smov 0   ;;  %s801_s0 = inlined_call_operand.vmem [shape: f32[2,16,128], index: 0, kind: input, shape index: {}]   ;;  %s802_s1 = inlined_call_operand.vmem [shape: f32[3,128,128], index: 1, kind: input, shape index: {}]   ;;  %s803_s2 = inlined_call_operand.vmem [shape: f32[1,128], index: 2, kind: input, shape index: {}]   ;;  %s804_s3 = inlined_call_operand.vmem [shape: f32[1,128], index: 3, kind: input, shape index: {}]   ;;  %s805_s4 = inlined_call_operand.vmem [shape: f32[2,16,128], index: 4, kind: output, shape index: {0}]   ;;  %s806_s5 = inlined_call_operand.vmem [shape: f32[2,8,128], index: 5, kind: output, shape index: {1}]  }
   0x1 LB: > { %s503_s19 = sadd.s32 4294967295, %s581_s18   ;;  %p507_p0 = scmp.ge.s32.totalorder %s581_s18, 1  ;;  %s581_s18 = sphi %s613_s18, %s16_s18  }
   0x2   : > { %p190_p1 = scmp.lt.s32.totalorder %s581_s18, 3 }
   0x4   : > { %p191_p2 = pnand %p507_p0, %p190_p1 }
   0x5   : > { %p650_p3 = scmp.lt.s32.totalorder (!%p191_p2), %s503_s19, 1 }
   0x6   : > { %194 = sbr.rel (%p191_p2) target bundleno = 208 (0xd0), region = 36 }
   0xb   : > { %v267_v0 = vld [vmem:[%s802_s1 + $0x78] sm:$0xff]  ;;  %v266_v3 = vld [vmem:[%s802_s1 + $0x70] sm:$0xff]  ;;  %v265_v6 = vld [vmem:[%s802_s1 + $0x68] sm:$0xff]  ;;  %s809_s19 = smov (!%p650_p3, %s503_s19), 1  ;;  %v348_v58 = vlaneseq  ;;  %vm412_vm4 = vcmask 1040384   ;;  %vm414_vm5 = vcmask 1041408  }
   0xc   : > { %v544_v1 = vld [vmem:[%s802_s1 + $0x178] sm:$0xff]  ;;  %549 = vmatpush.msra.mxu3 %v267_v0  ;;  %v543_v4 = vld [vmem:[%s802_s1 + $0x170] sm:$0xff]  ;;  %v542_v7 = vld [vmem:[%s802_s1 + $0x168] sm:$0xff]  ;;  %268 = vmatpush.msra.mxu0 %v267_v0  ;;  %s547_s15 = sshll.u32 %s809_s19, 4 }
   0xd   : > { %v528_v2 = vld [vmem:[%s802_s1 + $0xf8] sm:$0xff]  ;;  %325 = vmatpush.msra.mxu1 %v544_v1  ;;  %v527_v5 = vld [vmem:[%s802_s1 + $0xf0] sm:$0xff]  ;;  %v526_v8 = vld [vmem:[%s802_s1 + $0xe8] sm:$0xff]  ;;  %s226_s30 = scalar_lea.vmem %s801_s0, %s547_s15  ;;  %v349_v60 = vshrl.u32 %v348_v58, 7  ;;  %s231_s12 = scalar_lea.vmem %s805_s4, %s547_s15 }
   0xe   : > { %360 = vmatpush.msra.mxu2 %v528_v2  ;;  %550 = vmatpush.msra.mxu3 %v266_v3  ;;  %v264_v9 = vld [vmem:[%s802_s1 + $0x60] sm:$0xff]  ;;  %v263_v12 = vld [vmem:[%s802_s1 + $0x58] sm:$0xff]  ;;  %v262_v15 = vld [vmem:[%s802_s1 + $0x50] sm:$0xff]  ;;  %s512_s15 = sshll.u32 %s809_s19, 3 }
   0xf   : > { %326 = vmatpush.msra.mxu1 %v543_v4  ;;  %v541_v10 = vld [vmem:[%s802_s1 + $0x160] sm:$0xff]  ;;  %269 = vmatpush.msra.mxu0 %v266_v3  ;;  %v540_v13 = vld [vmem:[%s802_s1 + $0x158] sm:$0xff]  ;;  %v539_v16 = vld [vmem:[%s802_s1 + $0x150] sm:$0xff]  ;;  %vm355_vm0 = vcmp.lt.s32.totalorder %v349_v60, 1  ;;  %vm351_vm1 = vcmp.eq.s32.totalorder %v349_v60, 0  ;;  %vm387_vm2 = vcmp.lt.s32.totalorder %v349_v60, 7  ;;  %s235_s16 = scalar_lea.vmem %s806_s5, %s512_s15 }
  0x10   : > { %361 = vmatpush.msra.mxu2 %v527_v5  ;;  %551 = vmatpush.msra.mxu3 %v265_v6  ;;  %v525_v11 = vld [vmem:[%s802_s1 + $0xe0] sm:$0xff]  ;;  %v524_v14 = vld [vmem:[%s802_s1 + $0xd8] sm:$0xff]  ;;  %v523_v17 = vld [vmem:[%s802_s1 + $0xd0] sm:$0xff] }
  0x11   : > { %327 = vmatpush.msra.mxu1 %v542_v7  ;;  %270 = vmatpush.msra.mxu0 %v265_v6  ;;  %v261_v18 = vld [vmem:[%s802_s1 + $0x48] sm:$0xff]  ;;  %v260_v21 = vld [vmem:[%s802_s1 + $0x40] sm:$0xff]  ;;  %v259_v24 = vld [vmem:[%s802_s1 + $0x38] sm:$0xff]  ;;  %v350_v7 = vadd.s32 8, %v349_v60 }
  0x12   : > { %362 = vmatpush.msra.mxu2 %v526_v8  ;;  %552 = vmatpush.msra.mxu3 %v264_v9  ;;  %v538_v19 = vld [vmem:[%s802_s1 + $0x148] sm:$0xff]  ;;  %v537_v22 = vld [vmem:[%s802_s1 + $0x140] sm:$0xff]  ;;  %v536_v25 = vld [vmem:[%s802_s1 + $0x138] sm:$0xff] }
  0x13   : > { %328 = vmatpush.msra.mxu1 %v541_v10  ;;  %271 = vmatpush.msra.mxu0 %v264_v9  ;;  %v522_v20 = vld [vmem:[%s802_s1 + $0xc8] sm:$0xff]  ;;  %v521_v23 = vld [vmem:[%s802_s1 + $0xc0] sm:$0xff]  ;;  %v520_v26 = vld [vmem:[%s802_s1 + $0xb8] sm:$0xff]  ;;  %vm384_vm3 = vcmp.eq.s32.totalorder %v350_v7, 15 }
  0x14   : > { %363 = vmatpush.msra.mxu2 %v525_v11  ;;  %553 = vmatpush.msra.mxu3 %v263_v12  ;;  %v258_v27 = vld [vmem:[%s802_s1 + $0x30] sm:$0xff]  ;;  %v573_v29 = vld [vmem:[%s803_s2] ss:$0 sm:$0xff]  ;;  %v237_v31 = vld [vmem:[%s226_s30 + $0x8] sm:$0xff] }
  0x15   : > { %329 = vmatpush.msra.mxu1 %v540_v13  ;;  %272 = vmatpush.msra.mxu0 %v263_v12  ;;  %v535_v28 = vld [vmem:[%s802_s1 + $0x130] sm:$0xff]  ;;  %v257_v32 = vld [vmem:[%s802_s1 + $0x28] sm:$0xff]  ;;  %v236_v34 = vld [vmem:[%s226_s30] sm:$0xff]  ;;  %v243_v38 = vmul.f32 %v573_v29, %v237_v31 }
  0x16   : > { %364 = vmatpush.msra.mxu2 %v524_v14  ;;  %554 = vmatpush.msra.mxu3 %v262_v15  ;;  %v519_v30 = vld [vmem:[%s802_s1 + $0xb0] sm:$0xff]  ;;  %v534_v33 = vld [vmem:[%s802_s1 + $0x128] sm:$0xff]  ;;  %v256_v36 = vld [vmem:[%s802_s1 + $0x20] sm:$0xff]  ;;  %v242_v41 = vmul.f32 %v573_v29, %v236_v34 }
  0x17   : > { %330 = vmatpush.msra.mxu1 %v539_v16  ;;  %273 = vmatpush.msra.mxu0 %v262_v15  ;;  %v518_v35 = vld [vmem:[%s802_s1 + $0xa8] sm:$0xff]  ;;  %v533_v37 = vld [vmem:[%s802_s1 + $0x120] sm:$0xff]  ;;  %v255_v42 = vld [vmem:[%s802_s1 + $0x18] sm:$0xff] }
  0x18   : > { %365 = vmatpush.msra.mxu2 %v523_v17  ;;  %555 = vmatpush.msra.mxu3 %v261_v18  ;;  %v574_v39 = vld [vmem:[%s804_s3] ss:$0 sm:$0xff]  ;;  %v532_v43 = vld [vmem:[%s802_s1 + $0x118] sm:$0xff]  ;;  %v254_v45 = vld [vmem:[%s802_s1 + $0x10] sm:$0xff] }
  0x19   : > { %331 = vmatpush.msra.mxu1 %v538_v19  ;;  %274 = vmatpush.msra.mxu0 %v261_v18  ;;  %v517_v40 = vld [vmem:[%s802_s1 + $0xa0] sm:$0xff]  ;;  %v516_v44 = vld [vmem:[%s802_s1 + $0x98] sm:$0xff]  ;;  %v531_v46 = vld [vmem:[%s802_s1 + $0x110] sm:$0xff]  ;;  %v249_v47 = vadd.f32 %v574_v39, %v243_v38  ;;  %v248_v49 = vadd.f32 %v574_v39, %v242_v41 }
  0x1a   : > { %366 = vmatpush.msra.mxu2 %v522_v20  ;;  %556 = vmatpush.msra.mxu3 %v260_v21  ;;  %v515_v48 = vld [vmem:[%s802_s1 + $0x90] sm:$0xff]  ;;  %v253_v50 = vld [vmem:[%s802_s1 + $0x8] sm:$0xff]  ;;  %v252_v53 = vld [vmem:[%s802_s1] sm:$0xff] }
  0x1b   : > { %332 = vmatpush.msra.mxu1 %v537_v22  ;;  %275 = vmatpush.msra.mxu0 %v260_v21  ;;  %v530_v51 = vld [vmem:[%s802_s1 + $0x108] sm:$0xff]  ;;  %v529_v54 = vld [vmem:[%s802_s1 + $0x100] sm:$0xff]  ;;  %v251_v55 = vmax.f32 %v249_v47, 0.0  ;;  %v250_v57 = vmax.f32 %v248_v49, 0.0 }
  0x1c   : > { %367 = vmatpush.msra.mxu2 %v521_v23  ;;  %557 = vmatpush.msra.mxu3 %v259_v24  ;;  %v514_v52 = vld [vmem:[%s802_s1 + $0x88] sm:$0xff]  ;;  %v513_v56 = vld [vmem:[%s802_s1 + $0x80] sm:$0xff] }
  0x1d   : > { %333 = vmatpush.msra.mxu1 %v536_v25  ;;  %276 = vmatpush.msra.mxu0 %v259_v24 }
  0x1e   : > { %368 = vmatpush.msra.mxu2 %v520_v26  ;;  %558 = vmatpush.msra.mxu3 %v258_v27 }
  0x1f   : > { %334 = vmatpush.msra.mxu1 %v535_v28  ;;  %277 = vmatpush.msra.mxu0 %v258_v27 }
  0x20   : > { %369 = vmatpush.msra.mxu2 %v519_v30  ;;  %559 = vmatpush.msra.mxu3 %v257_v32 }
  0x21   : > { %335 = vmatpush.msra.mxu1 %v534_v33  ;;  %278 = vmatpush.msra.mxu0 %v257_v32 }
  0x22   : > { %370 = vmatpush.msra.mxu2 %v518_v35  ;;  %560 = vmatpush.msra.mxu3 %v256_v36 }
  0x23   : > { %336 = vmatpush.msra.mxu1 %v533_v37  ;;  %279 = vmatpush.msra.mxu0 %v256_v36 }
  0x24   : > { %371 = vmatpush.msra.mxu2 %v517_v40  ;;  %561 = vmatpush.msra.mxu3 %v255_v42 }
  0x25   : > { %337 = vmatpush.msra.mxu1 %v532_v43  ;;  %280 = vmatpush.msra.mxu0 %v255_v42 }
  0x26   : > { %372 = vmatpush.msra.mxu2 %v516_v44  ;;  %562 = vmatpush.msra.mxu3 %v254_v45 }
  0x27   : > { %338 = vmatpush.msra.mxu1 %v531_v46  ;;  %281 = vmatpush.msra.mxu0 %v254_v45 }
  0x28   : > { %373 = vmatpush.msra.mxu2 %v515_v48  ;;  %563 = vmatpush.msra.mxu3 %v253_v50 }
  0x29   : > { %339 = vmatpush.msra.mxu1 %v530_v51  ;;  %282 = vmatpush.msra.mxu0 %v253_v50 }
  0x2a   : > { %374 = vmatpush.msra.mxu2 %v514_v52  ;;  %564 = vmatpush.msra.mxu3 %v252_v53 }
  0x2b   : > { %340 = vmatpush.msra.mxu1 %v529_v54  ;;  %287 = vmatmul.f32.vlgmr.msra.gmra.mxu3 %v251_v55 }
  0x2c   : > { %375 = vmatpush.msra.mxu2 %v513_v56  ;;  %341 = vmatmul.f32.vlgmr.msra.gmra.mxu1 %v250_v57 }
  0x2d   : > { %376 = vmatmul.f32.vlgmr.msra.gmra.mxu2 %v250_v57  ;;  %283 = vmatpush.msra.mxu0 %v252_v53 }
  0x2e   : > { %284 = vmatmul.f32.vlgmr.msra.gmra.mxu0 %v250_v57 }
  0x34   : > { %344 = vmatmul.f32.gmra.mxu1 %v251_v55 }
  0x35   : > { %379 = vmatmul.f32.gmra.mxu2 %v251_v55 }
  0xa9   : > { %v342_v59 = vpop.f32.mrf.mxu1 }
  0xaa   : > { %v385_v4 = vrot.slane %v342_v59, 1 }
  0xab   : > { %v285_v61 = vpop.f32.mrf.mxu0 }
  0xac   : > { %v353_v62 = vrot.slane %v285_v61, 7 }
  0xae   : > { %v288_v63 = vpop.f32.mrf.mxu3 }
  0xaf   : > { %v354_v0 = vrot.slane %v288_v63, 7 }
  0xb0   : > { %v377_v1 = vpop.f32.mrf.mxu2 }
  0xb1   : > { %v357_v2 = vsel %vm355_vm0, %v354_v0, %v353_v62  ;;  %v345_v3 = vpop.f32.mrf.mxu1  ;;  %v356_v11 = vsel %vm355_vm0, %v353_v62, %v354_v0 }
  0xb2   : > { %v358_v5 = vsel %vm351_vm1, 0.0, %v357_v2  ;;  %v386_v6 = vrot.slane %v345_v3, 1 }
  0xb3   : > { %v378_v8 = vadd.f32 %v377_v1, %v358_v5 }
  0xb4   : > { %v388_v9 = vsel %vm387_vm2, %v385_v4, %v386_v6  ;;  %v389_v12 = vsel %vm387_vm2, %v386_v6, %v385_v4 }
  0xb5   : > { %v392_v10 = vadd.f32 %v388_v9, %v378_v8  ;;  %v391_v15 = vsel %vm384_vm3, 0.0, %v389_v12 }
  0xb7   : > { %394 = vst [vmem:[%s231_s12] sm:$0xff] %v392_v10  ;;  %v403_v17 = vmul.f32 %v392_v10, %v392_v10 }
  0xb8   : > { %v380_v13 = vpop.f32.mrf.mxu2 }
  0xb9   : > { %v381_v14 = vadd.f32 %v380_v13, %v356_v11 }
  0xbb   : > { %v393_v16 = vadd.f32 %v391_v15, %v381_v14 }
  0xbd   : > { %395 = vst [vmem:[%s231_s12 + $0x8] sm:$0xff] %v393_v16  ;;  %v396_v18 = vadd.f32 %v393_v16, %v392_v10  ;;  %v404_v19 = vmul.f32 %v393_v16, %v393_v16 }
  0xbf   : > { %v397_v20 = vrot.slane %v396_v18, 4  ;;  %v405_v21 = vadd.f32 %v404_v19, %v403_v17 }
  0xc1   : > { %v398_v22 = vadd.f32 %v397_v20, %v396_v18  ;;  %v406_v23 = vrot.slane %v405_v21, 4 }
  0xc3   : > { %v399_v24 = vrot.slane %v398_v22, 2  ;;  %v407_v25 = vadd.f32 %v406_v23, %v405_v21 }
  0xc5   : > { %v400_v26 = vadd.f32 %v399_v24, %v398_v22  ;;  %v408_v27 = vrot.slane %v407_v25, 2 }
  0xc7   : > { %v401_v28 = vrot.slane %v400_v26, 1  ;;  %v409_v29 = vadd.f32 %v408_v27, %v407_v25 }
  0xc9   : > { %v410_v30 = vrot.slane %v409_v29, 1  ;;  %v402_v31 = vadd.f32 %v401_v28, %v400_v26 }
  0xcb   : > { %v411_v32 = vadd.f32 %v410_v30, %v409_v29 }
  0xcd   : > { %v413_v33 = vsel %vm412_vm4, %v402_v31, %v411_v32 }
  0xce   : > { %v415_v34 = vsel %vm414_vm5, %v413_v33, 0.0 }
  0xcf   : > { %416 = vst [vmem:[%s235_s16] sm:$0xff] %v415_v34 }
  0xd0 PF: > { %s16_s18 = sadd.s32 1, %s581_s18  }
  0xd1   : > { %p13_p4 = scmp.ge.s32.totalorder %s16_s18, 4  }
  0xd3   :  { %15 = sbr.rel (!%p13_p4) target bundleno = 1 (0x1), region = 80 }

</bundles_post_ra>
